<compile_context>
chip_gen: v7x
topology: tpu7x:2x2x1
jax: 0.10.0
libtpu: 0.0.40
codegen_flags: <defaults>
</compile_context>

<pallas_src>
import jax
import jax.numpy as jnp
from jax.experimental import pallas as pl
from jax.experimental.pallas import tpu as pltpu

_LANES = 128
_TARGET_STEPS = 8  # keep several grid steps so pipelining / v7x dual-TC sharding engage


def _round_up(a: int, b: int) -> int:
    return ((a + b - 1) // b) * b


def _linear_kernel(m_ref, b_ref, x_ref, o_ref):
    # m_ref / b_ref: (1, 1) scalars in SMEM.
    # x_ref / o_ref: (br, 128) lane-dense tiles in VMEM.
    m = m_ref[0, 0]
    b = b_ref[0, 0]
    o_ref[...] = (m * x_ref[...] + b).astype(o_ref.dtype)


def linear_model_forward(x, m, b, *, block_rows: int = 4096):
    """y = m * x + b  (m, b are shape-(1,) parameters; x is any shape)."""
    orig_shape = x.shape
    n = x.size
    itemsize = jnp.dtype(x.dtype).itemsize
    # Dtype-aware sublane multiple: 8 rows for f32, 16 for bf16, 32 for int8/fp8.
    sub = 8 * max(1, 4 // itemsize)

    rows_needed = max(pl.cdiv(n, _LANES), 1)
    r_total = _round_up(rows_needed, sub)
    pad = r_total * _LANES - n

    x_flat = x.reshape(-1)
    if pad:
        x_flat = jnp.pad(x_flat, (0, pad))      # fresh temp only when ragged
    x_slab = x_flat.reshape(r_total, _LANES)    # lane-dense slab

    # Tile: big enough to amortize ~0.35 us/step overhead, small enough that
    # 4 pipelined buffers fit every chip's scoped VMEM (2 MiB f32 at 4096 rows),
    # and capped so mid-size inputs still get ~_TARGET_STEPS grid steps.
    br = min(block_rows, _round_up(pl.cdiv(r_total, _TARGET_STEPS), sub))
    grid = (pl.cdiv(r_total, br),)

    m_s = m.reshape(1, 1)
    b_s = b.reshape(1, 1)

    # Only alias when the slab is a wrapper-local padded temp; otherwise XLA
    # would insert a defensive copy of the caller's x behind the alias.
    aliases = {2: 0} if pad else {}

    y_slab = pl.pallas_call(
        _linear_kernel,
        out_shape=jax.ShapeDtypeStruct((r_total, _LANES), x.dtype),
        grid=grid,
        in_specs=[
            pl.BlockSpec(memory_space=pltpu.SMEM),          # m scalar
            pl.BlockSpec(memory_space=pltpu.SMEM),          # b scalar
            pl.BlockSpec((br, _LANES), lambda i: (i, 0)),   # lane-dense x tile
        ],
        out_specs=pl.BlockSpec((br, _LANES), lambda i: (i, 0)),
        compiler_params=pltpu.CompilerParams(
            dimension_semantics=("parallel",),
        ),
        cost_estimate=pl.CostEstimate(
            flops=2 * n,
            transcendentals=0,
            bytes_accessed=2 * n * itemsize,
        ),
        input_output_aliases=aliases,
    )(m_s, b_s, x_slab)

    if pad:
        return y_slab.reshape(-1)[:n].reshape(orig_shape)
    return y_slab.reshape(orig_shape)


if __name__ == "__main__":
    key = jax.random.PRNGKey(0)
    km, kb = jax.random.split(key)

    # Deterministic parameter init (matches nn.Parameter(torch.randn(1)) shapes).
    m = jax.random.normal(km, (1,), dtype=jnp.float32)
    b = jax.random.normal(kb, (1,), dtype=jnp.float32)

    # Input consistent with the module's usage: x = linspace(-1, 1, 100).unsqueeze(1)
    x = jnp.linspace(-1.0, 1.0, 100, dtype=jnp.float32).reshape(100, 1)

    fwd = jax.jit(linear_model_forward)
    y = fwd(x, m, b)
    jax.block_until_ready(y)

    # Reference check against plain JAX.
    y_ref = m[0] * x + b[0]
    assert y.shape == (100, 1)
    assert jnp.allclose(y, y_ref, atol=1e-6), "mismatch vs reference"

    print("KERNEL_OK")
</pallas_src>

<mosaic_0001>
module attributes {stable_mosaic.version = 11 : i64} {
  func.func @_linear_kernel(%arg0: i32, %arg1: memref<1x1xf32, #tpu.memory_space<smem>>, %arg2: memref<1x1xf32, #tpu.memory_space<smem>>, %arg3: memref<8x128xf32, #tpu.memory_space<vmem>>, %arg4: memref<8x128xf32, #tpu.memory_space<vmem>>) attributes {dimension_semantics = [#tpu.dimension_semantics<parallel>], iteration_bounds = array<i64: 1>, scalar_prefetch = 0 : i64, scratch_operands = 0 : i64, tpu.core_type = #tpu.core_type<tc>, window_params = [{transform_indices = @transform_0, window_bounds = array<i64: 1, 1>}, {transform_indices = @transform_1, window_bounds = array<i64: 1, 1>}, {transform_indices = @transform_2, window_bounds = array<i64: 8, 128>}, {transform_indices = @transform_3, window_bounds = array<i64: 8, 128>}]} {
    %c0 = arith.constant 0 : index
    %c0_0 = arith.constant 0 : index
    %0 = memref.load %arg1[%c0, %c0_0] : memref<1x1xf32, #tpu.memory_space<smem>>
    %c0_1 = arith.constant 0 : index
    %c0_2 = arith.constant 0 : index
    %1 = memref.load %arg2[%c0_1, %c0_2] : memref<1x1xf32, #tpu.memory_space<smem>>
    %c0_3 = arith.constant 0 : index
    %c0_4 = arith.constant 0 : index
    %2 = vector.load %arg3[%c0_3, %c0_4] : memref<8x128xf32, #tpu.memory_space<vmem>>, vector<8x128xf32>
    %3 = vector.broadcast %0 : f32 to vector<8x128xf32>
    %4 = arith.mulf %3, %2 : vector<8x128xf32>
    %5 = vector.broadcast %1 : f32 to vector<8x128xf32>
    %6 = arith.addf %4, %5 : vector<8x128xf32>
    %c0_5 = arith.constant 0 : index
    %c0_6 = arith.constant 0 : index
    %7 = vector.load %arg4[%c0_5, %c0_6] : memref<8x128xf32, #tpu.memory_space<vmem>>, vector<8x128xf32>
    tpu.vector_store %arg4[%c0_5, %c0_6], %6 {strides = array<i32>} : memref<8x128xf32, #tpu.memory_space<vmem>>, vector<8x128xf32>,
    return
  }
  func.func @transform_0(%arg0: i32) -> (i32, i32) {
    %c0_i32 = arith.constant 0 : i32
    %c0_i32_0 = arith.constant 0 : i32
    %c0_i32_1 = arith.constant 0 : i32
    return %c0_i32, %c0_i32_0 : i32, i32
  }
  func.func @transform_1(%arg0: i32) -> (i32, i32) {
    %c0_i32 = arith.constant 0 : i32
    %c0_i32_0 = arith.constant 0 : i32
    %c0_i32_1 = arith.constant 0 : i32
    return %c0_i32, %c0_i32_0 : i32, i32
  }
  func.func @transform_2(%arg0: i32) -> (i32, i32) {
    %c0_i32 = arith.constant 0 : i32
    %c0_i32_0 = arith.constant 0 : i32
    return %arg0, %c0_i32 : i32, i32
  }
  func.func @transform_3(%arg0: i32) -> (i32, i32) {
    %c0_i32 = arith.constant 0 : i32
    %c0_i32_0 = arith.constant 0 : i32
    return %arg0, %c0_i32 : i32, i32
  }
}

</mosaic_0001>

<bundles_post_ra>
// kernel: linear_model_forward.1
= control target key start
LH: loop header
LB: loop body
LE: loop exit
PB: predicated region body
PF: predicated region fallthrough
CT: control target
= control target key end

     0   :  { %s60_s0 = inlined_call_operand.<no memory space> [shape: f32[1,1], index: 0, kind: input, shape index: {}]   ;;  %s61_s1 = inlined_call_operand.<no memory space> [shape: f32[1,1], index: 1, kind: input, shape index: {}]   ;;  %s62_s2 = inlined_call_operand.vmem [shape: f32[8,128], index: 2, kind: input, shape index: {}, may-alias: {2,3}]   ;;  %s63_s3 = inlined_call_operand.vmem [shape: f32[8,128], index: 3, kind: output, shape index: {}, may-alias: {2,3}]  }
   0x1   :  { %v18_v0 = vld [vmem:[%s62_s2] sm:$0xff]  ;;  %v19_v1 = vstv %s60_s0  ;;  %v21_v2 = vstv %s61_s1 }
   0x2   :  { %v20_v3 = vmul.f32 %v19_v1, %v18_v0 }
   0x4   :  { %v22_v4 = vadd.f32 %v21_v2, %v20_v3 }
   0x6   :  { %23 = vst [vmem:[%s63_s3] sm:$0xff] %v22_v4 }

</bundles_post_ra>
